<compile_context>
chip_gen: v7x
topology: tpu7x:2x2x1
jax: 0.10.0
libtpu: 0.0.40
codegen_flags: <defaults>
</compile_context>

<pallas_src>
import functools

import numpy as np
import jax
import jax.numpy as jnp
from jax import lax
from jax.experimental import pallas as pl
from jax.experimental.pallas import tpu as pltpu


# ---------------------------------------------------------------------------
# Schedule construction (numpy, matches diffusion_utils of the reference repo)
# ---------------------------------------------------------------------------
def cosine_beta_schedule(timesteps, s=0.008, raise_to_power=1.0):
    steps = timesteps + 2
    x = np.linspace(0, steps, steps)
    alphas_cumprod = np.cos(((x / steps) + s) / (1 + s) * np.pi * 0.5) ** 2
    alphas_cumprod = alphas_cumprod / alphas_cumprod[0]
    betas = 1 - (alphas_cumprod[1:] / alphas_cumprod[:-1])
    betas = np.clip(betas, a_min=0, a_max=0.999)
    alphas = 1.0 - betas
    alphas_cumprod = np.cumprod(alphas, axis=0)
    if raise_to_power != 1:
        alphas_cumprod = np.power(alphas_cumprod, raise_to_power)
    return alphas_cumprod  # length = timesteps + 1


def linear_beta_schedule(timesteps):
    # simple linear alphas^2 schedule (clipped away from 0/1 so logs are finite)
    return np.linspace(1.0 - 1e-4, 1e-4, timesteps + 1)


def build_gamma_table(noise_schedule, timesteps):
    if noise_schedule == "cosine":
        alphas2 = cosine_beta_schedule(timesteps)
    elif noise_schedule == "linear":
        alphas2 = linear_beta_schedule(timesteps)
    else:
        # TODO(synk): 'custom' schedule raises NotImplementedError in the spec.
        raise ValueError(noise_schedule)
    sigmas2 = 1 - alphas2
    log_alphas2_to_sigmas2 = np.log(alphas2) - np.log(sigmas2)
    return (-log_alphas2_to_sigmas2).astype(np.float32)  # (timesteps + 1,)


def _round_up(x, m):
    return ((x + m - 1) // m) * m


# ---------------------------------------------------------------------------
# Pallas kernel: clamp(round(t * T)) + grouped one-hot gather from gamma table
# ---------------------------------------------------------------------------
def _gamma_lookup_kernel(t_ref, gamma_ref, o_ref, *, timesteps):
    # t_ref:     (1, tb)        f32  -- diffusion times, batch along lanes
    # gamma_ref: (G, 8, 128)    f32  -- gamma rows along sublanes, lane-replicated
    # o_ref:     (1, tb)        f32  -- lane-dense output
    tb = t_ref.shape[1]
    n_groups = gamma_ref.shape[0]
    lane_rep = tb // 128

    t = t_ref[...]                                               # (1, tb)
    # torch.round / jnp.round both round half-to-even -> semantics match.
    # Clamp (in f32, before the int cast) so slightly OOB / garbage lanes in a
    # ragged last block cannot produce wild indices; valid lanes are unchanged.
    t_round = jnp.clip(jnp.round(t * float(timesteps)), 0.0, float(timesteps))
    t_int = t_round.astype(jnp.int32)                            # (1, tb)

    # Hoisted: sublane broadcast of the target index and a single (8, tb) iota
    # (values 0..7 along sublanes); the loop only adds a scalar group offset.
    t_idx = jnp.broadcast_to(t_int, (8, tb))                     # (8, tb)
    sub_iota = lax.broadcasted_iota(jnp.int32, (8, tb), 0)       # (8, tb)

    def body(g, acc):
        rows = gamma_ref[g]                                      # (8, 128)
        if lane_rep > 1:
            rows = jnp.tile(rows, (1, lane_rep))                 # (8, tb)
        mask = (sub_iota + g * 8) == t_idx                       # (8, tb)
        return acc + jnp.where(mask, rows, 0.0)

    acc = lax.fori_loop(0, n_groups, body,
                        jnp.zeros((8, tb), jnp.float32), unroll=True)
    # Exactly one non-zero per lane across all groups/sublanes -> exact sum.
    o_ref[...] = jnp.sum(acc, axis=0, keepdims=True)             # (1, tb)


def gamma_lookup_pallas(t_flat, gamma_grouped, timesteps, *, block_b=1024):
    """t_flat: (B,) f32 times; gamma_grouped: (G, 8, 128) f32. Returns (B,) f32."""
    b = t_flat.shape[0]
    n_groups = gamma_grouped.shape[0]
    block_b = max(128, _round_up(block_b, 128))

    if b <= block_b:
        # Single block: pad lanes to a multiple of 128 so the store is dense.
        tb = _round_up(max(b, 128), 128)
        nblocks = 1
        t_in = t_flat.reshape(1, b)
        if tb != b:
            t_in = jnp.pad(t_in, ((0, 0), (0, tb - b)))
        out_cols = tb
    else:
        # Multi-block: no wrapper pad / slice. Pallas masks the ragged last
        # block's output writes; garbage input lanes are clamped in-kernel.
        tb = block_b
        nblocks = pl.cdiv(b, tb)
        t_in = t_flat.reshape(1, b)
        out_cols = b

    kernel = functools.partial(_gamma_lookup_kernel, timesteps=timesteps)
    out = pl.pallas_call(
        kernel,
        out_shape=jax.ShapeDtypeStruct((1, out_cols), jnp.float32),
        grid=(nblocks,),
        in_specs=[
            pl.BlockSpec((1, tb), lambda i: (0, i)),
            pl.BlockSpec((n_groups, 8, 128), lambda i: (0, 0, 0)),
        ],
        out_specs=pl.BlockSpec((1, tb), lambda i: (0, i)),
        compiler_params=pltpu.CompilerParams(
            dimension_semantics=("parallel",)),
        cost_estimate=pl.CostEstimate(
            flops=3 * out_cols * n_groups * 8,
            transcendentals=0,
            bytes_accessed=4 * (2 * out_cols + n_groups * 8 * 128)),
    )(t_in, gamma_grouped)
    return out[0, :b]


# ---------------------------------------------------------------------------
# Module-equivalent wrapper
# ---------------------------------------------------------------------------
class PredefinedNoiseSchedule:
    """JAX/Pallas port of the PyTorch PredefinedNoiseSchedule module."""

    def __init__(self, noise_schedule, timesteps):
        self.timesteps = timesteps
        gamma_np = build_gamma_table(noise_schedule, timesteps)    # (T+1,)
        self.gamma = jnp.asarray(gamma_np)                          # flat table
        table_len = gamma_np.shape[0]
        n_groups = _round_up(table_len, 8) // 8
        padded = np.zeros((n_groups * 8,), np.float32)
        padded[:table_len] = gamma_np
        # (G, 8, 128): rows along sublanes, replicated across 128 lanes — built
        # once at init so the kernel never lane-broadcasts a column at runtime.
        self.gamma_grouped = jnp.asarray(
            np.broadcast_to(padded.reshape(n_groups, 8, 1),
                            (n_groups, 8, 128)).copy())

    def __call__(self, t, *, block_b=1024, force_pallas=False,
                 xla_fallback_max_b=512):
        orig_shape = t.shape
        t_flat = t.reshape(-1).astype(jnp.float32)
        b = t_flat.shape[0]
        if (not force_pallas) and b <= xla_fallback_max_b:
            # Standalone dispatch of a tiny lookup: a fused XLA gather beats
            # any pallas_call launch. The Pallas path pays off for large B or
            # when fused into a larger Pallas pipeline.
            t_int = jnp.clip(
                jnp.round(t_flat * self.timesteps).astype(jnp.int32),
                0, self.timesteps)
            return self.gamma[t_int].reshape(orig_shape)
        out = gamma_lookup_pallas(t_flat, self.gamma_grouped, self.timesteps,
                                  block_b=block_b)
        return out.reshape(orig_shape)


# ---------------------------------------------------------------------------
# Demo / self-test
# ---------------------------------------------------------------------------
if __name__ == "__main__":
    TIMESTEPS = 250
    sched = PredefinedNoiseSchedule("cosine", TIMESTEPS)

    def reference(t):
        t_int = jnp.clip(jnp.round(t * TIMESTEPS).astype(jnp.int32),
                         0, TIMESTEPS)
        return sched.gamma[t_int.reshape(-1)].reshape(t.shape)

    key = jax.random.PRNGKey(0)
    k1, k2, k3 = jax.random.split(key, 3)

    # --- Small batch (module-typical): single dense block --------------------
    t_small = jax.random.uniform(k1, (8, 1), dtype=jnp.float32)     # [0, 1)
    out_small = jax.block_until_ready(sched(t_small, force_pallas=True))
    np.testing.assert_allclose(np.asarray(out_small),
                               np.asarray(reference(t_small)), rtol=0, atol=0)

    # --- Multi-block ragged path (tb = 128, last block partial) --------------
    t_mid = jax.random.uniform(k2, (300, 1), dtype=jnp.float32)
    out_mid = jax.block_until_ready(
        sched(t_mid, block_b=128, force_pallas=True))
    np.testing.assert_allclose(np.asarray(out_mid),
                               np.asarray(reference(t_mid)), rtol=0, atol=0)

    # --- Wide blocks (tb = 1024, lane replication + ragged last block) -------
    t_big = jax.random.uniform(k3, (2000, 1), dtype=jnp.float32)
    out_big = jax.block_until_ready(
        sched(t_big, block_b=1024, force_pallas=True))
    np.testing.assert_allclose(np.asarray(out_big),
                               np.asarray(reference(t_big)), rtol=0, atol=0)

    # XLA fallback path parity (small standalone batches).
    out_fb = jax.block_until_ready(sched(t_small))
    np.testing.assert_allclose(np.asarray(out_fb),
                               np.asarray(reference(t_small)), rtol=0, atol=0)

    print("KERNEL_OK")
</pallas_src>

<mosaic_0001>
module attributes {stable_mosaic.version = 11 : i64} {
  func.func @_gamma_lookup_kernel(%arg0: i32, %arg1: memref<1x128xf32, #tpu.memory_space<vmem>>, %arg2: memref<32x8x128xf32, #tpu.memory_space<vmem>>, %arg3: memref<1x128xf32, #tpu.memory_space<vmem>>) attributes {dimension_semantics = [#tpu.dimension_semantics<parallel>], iteration_bounds = array<i64: 1>, scalar_prefetch = 0 : i64, scratch_operands = 0 : i64, tpu.core_type = #tpu.core_type<tc>, window_params = [{transform_indices = @transform_0, window_bounds = array<i64: 1, 128>}, {pipeline_mode = #tpu.pipeline_mode<synchronous>, transform_indices = @transform_1, window_bounds = array<i64: 32, 8, 128>}, {transform_indices = @transform_2, window_bounds = array<i64: 1, 128>}]} {
    %c0 = arith.constant 0 : index
    %c0_0 = arith.constant 0 : index
    %0 = vector.load %arg1[%c0, %c0_0] : memref<1x128xf32, #tpu.memory_space<vmem>>, vector<1x128xf32>
    %cst = arith.constant 2.500000e+02 : f32
    %1 = vector.broadcast %cst : f32 to vector<1x128xf32>
    %2 = arith.mulf %0, %1 : vector<1x128xf32>
    %3 = math.roundeven %2 : vector<1x128xf32>
    %cst_1 = arith.constant 0.000000e+00 : f32
    %cst_2 = arith.constant 2.500000e+02 : f32
    %4 = vector.broadcast %cst_1 : f32 to vector<1x128xf32>
    %5 = arith.maximumf %4, %3 : vector<1x128xf32>
    %6 = vector.broadcast %cst_2 : f32 to vector<1x128xf32>
    %7 = arith.minimumf %6, %5 : vector<1x128xf32>
    %8 = arith.fptosi %7 : vector<1x128xf32> to vector<1x128xi32>
    %9 = vector.shape_cast %8 : vector<1x128xi32> to vector<1x128xi32>
    %10 = vector.broadcast %9 : vector<1x128xi32> to vector<8x128xi32>
    %11 = tpu.iota {dimensions = array<i32: 0>} : vector<8x128xi32>
    %cst_3 = arith.constant 0.000000e+00 : f32
    %12 = vector.broadcast %cst_3 : f32 to vector<8x128xf32>
    %c0_i32 = arith.constant 0 : i32
    %13 = arith.index_cast %c0_i32 : i32 to index
    %c0_4 = arith.constant 0 : index
    %c0_5 = arith.constant 0 : index
    %14 = vector.load %arg2[%13, %c0_4, %c0_5] : memref<32x8x128xf32, #tpu.memory_space<vmem>>, vector<1x8x128xf32>
    %15 = vector.shape_cast %14 : vector<1x8x128xf32> to vector<8x128xf32>
    %c8_i32 = arith.constant 8 : i32
    %16 = arith.muli %c0_i32, %c8_i32 : i32
    %17 = vector.broadcast %16 : i32 to vector<8x128xi32>
    %18 = arith.addi %11, %17 : vector<8x128xi32>
    %19 = arith.cmpi eq, %18, %10 : vector<8x128xi32>
    %cst_6 = arith.constant 0.000000e+00 : f32
    %20 = vector.broadcast %cst_6 : f32 to vector<8x128xf32>
    %21 = arith.select %19, %15, %20 : vector<8x128xi1>, vector<8x128xf32>
    %22 = arith.addf %12, %21 : vector<8x128xf32>
    %c1_i32 = arith.constant 1 : i32
    %23 = arith.index_cast %c1_i32 : i32 to index
    %c0_7 = arith.constant 0 : index
    %c0_8 = arith.constant 0 : index
    %24 = vector.load %arg2[%23, %c0_7, %c0_8] : memref<32x8x128xf32, #tpu.memory_space<vmem>>, vector<1x8x128xf32>
    %25 = vector.shape_cast %24 : vector<1x8x128xf32> to vector<8x128xf32>
    %c8_i32_9 = arith.constant 8 : i32
    %26 = arith.muli %c1_i32, %c8_i32_9 : i32
    %27 = vector.broadcast %26 : i32 to vector<8x128xi32>
    %28 = arith.addi %11, %27 : vector<8x128xi32>
    %29 = arith.cmpi eq, %28, %10 : vector<8x128xi32>
    %cst_10 = arith.constant 0.000000e+00 : f32
    %30 = vector.broadcast %cst_10 : f32 to vector<8x128xf32>
    %31 = arith.select %29, %25, %30 : vector<8x128xi1>, vector<8x128xf32>
    %32 = arith.addf %22, %31 : vector<8x128xf32>
    %c2_i32 = arith.constant 2 : i32
    %33 = arith.index_cast %c2_i32 : i32 to index
    %c0_11 = arith.constant 0 : index
    %c0_12 = arith.constant 0 : index
    %34 = vector.load %arg2[%33, %c0_11, %c0_12] : memref<32x8x128xf32, #tpu.memory_space<vmem>>, vector<1x8x128xf32>
    %35 = vector.shape_cast %34 : vector<1x8x128xf32> to vector<8x128xf32>
    %c8_i32_13 = arith.constant 8 : i32
    %36 = arith.muli %c2_i32, %c8_i32_13 : i32
    %37 = vector.broadcast %36 : i32 to vector<8x128xi32>
    %38 = arith.addi %11, %37 : vector<8x128xi32>
    %39 = arith.cmpi eq, %38, %10 : vector<8x128xi32>
    %cst_14 = arith.constant 0.000000e+00 : f32
    %40 = vector.broadcast %cst_14 : f32 to vector<8x128xf32>
    %41 = arith.select %39, %35, %40 : vector<8x128xi1>, vector<8x128xf32>
    %42 = arith.addf %32, %41 : vector<8x128xf32>
    %c3_i32 = arith.constant 3 : i32
    %43 = arith.index_cast %c3_i32 : i32 to index
    %c0_15 = arith.constant 0 : index
    %c0_16 = arith.constant 0 : index
    %44 = vector.load %arg2[%43, %c0_15, %c0_16] : memref<32x8x128xf32, #tpu.memory_space<vmem>>, vector<1x8x128xf32>
    %45 = vector.shape_cast %44 : vector<1x8x128xf32> to vector<8x128xf32>
    %c8_i32_17 = arith.constant 8 : i32
    %46 = arith.muli %c3_i32, %c8_i32_17 : i32
    %47 = vector.broadcast %46 : i32 to vector<8x128xi32>
    %48 = arith.addi %11, %47 : vector<8x128xi32>
    %49 = arith.cmpi eq, %48, %10 : vector<8x128xi32>
    %cst_18 = arith.constant 0.000000e+00 : f32
    %50 = vector.broadcast %cst_18 : f32 to vector<8x128xf32>
    %51 = arith.select %49, %45, %50 : vector<8x128xi1>, vector<8x128xf32>
    %52 = arith.addf %42, %51 : vector<8x128xf32>
    %c4_i32 = arith.constant 4 : i32
    %53 = arith.index_cast %c4_i32 : i32 to index
    %c0_19 = arith.constant 0 : index
    %c0_20 = arith.constant 0 : index
    %54 = vector.load %arg2[%53, %c0_19, %c0_20] : memref<32x8x128xf32, #tpu.memory_space<vmem>>, vector<1x8x128xf32>
    %55 = vector.shape_cast %54 : vector<1x8x128xf32> to vector<8x128xf32>
    %c8_i32_21 = arith.constant 8 : i32
    %56 = arith.muli %c4_i32, %c8_i32_21 : i32
    %57 = vector.broadcast %56 : i32 to vector<8x128xi32>
    %58 = arith.addi %11, %57 : vector<8x128xi32>
    %59 = arith.cmpi eq, %58, %10 : vector<8x128xi32>
    %cst_22 = arith.constant 0.000000e+00 : f32
    %60 = vector.broadcast %cst_22 : f32 to vector<8x128xf32>
    %61 = arith.select %59, %55, %60 : vector<8x128xi1>, vector<8x128xf32>
    %62 = arith.addf %52, %61 : vector<8x128xf32>
    %c5_i32 = arith.constant 5 : i32
    %63 = arith.index_cast %c5_i32 : i32 to index
    %c0_23 = arith.constant 0 : index
    %c0_24 = arith.constant 0 : index
    %64 = vector.load %arg2[%63, %c0_23, %c0_24] : memref<32x8x128xf32, #tpu.memory_space<vmem>>, vector<1x8x128xf32>
    %65 = vector.shape_cast %64 : vector<1x8x128xf32> to vector<8x128xf32>
    %c8_i32_25 = arith.constant 8 : i32
    %66 = arith.muli %c5_i32, %c8_i32_25 : i32
    %67 = vector.broadcast %66 : i32 to vector<8x128xi32>
    %68 = arith.addi %11, %67 : vector<8x128xi32>
    %69 = arith.cmpi eq, %68, %10 : vector<8x128xi32>
    %cst_26 = arith.constant 0.000000e+00 : f32
    %70 = vector.broadcast %cst_26 : f32 to vector<8x128xf32>
    %71 = arith.select %69, %65, %70 : vector<8x128xi1>, vector<8x128xf32>
    %72 = arith.addf %62, %71 : vector<8x128xf32>
    %c6_i32 = arith.constant 6 : i32
    %73 = arith.index_cast %c6_i32 : i32 to index
    %c0_27 = arith.constant 0 : index
    %c0_28 = arith.constant 0 : index
    %74 = vector.load %arg2[%73, %c0_27, %c0_28] : memref<32x8x128xf32, #tpu.memory_space<vmem>>, vector<1x8x128xf32>
    %75 = vector.shape_cast %74 : vector<1x8x128xf32> to vector<8x128xf32>
    %c8_i32_29 = arith.constant 8 : i32
    %76 = arith.muli %c6_i32, %c8_i32_29 : i32
    %77 = vector.broadcast %76 : i32 to vector<8x128xi32>
    %78 = arith.addi %11, %77 : vector<8x128xi32>
    %79 = arith.cmpi eq, %78, %10 : vector<8x128xi32>
    %cst_30 = arith.constant 0.000000e+00 : f32
    %80 = vector.broadcast %cst_30 : f32 to vector<8x128xf32>
    %81 = arith.select %79, %75, %80 : vector<8x128xi1>, vector<8x128xf32>
    %82 = arith.addf %72, %81 : vector<8x128xf32>
    %c7_i32 = arith.constant 7 : i32
    %83 = arith.index_cast %c7_i32 : i32 to index
    %c0_31 = arith.constant 0 : index
    %c0_32 = arith.constant 0 : index
    %84 = vector.load %arg2[%83, %c0_31, %c0_32] : memref<32x8x128xf32, #tpu.memory_space<vmem>>, vector<1x8x128xf32>
    %85 = vector.shape_cast %84 : vector<1x8x128xf32> to vector<8x128xf32>
    %c8_i32_33 = arith.constant 8 : i32
    %86 = arith.muli %c7_i32, %c8_i32_33 : i32
    %87 = vector.broadcast %86 : i32 to vector<8x128xi32>
    %88 = arith.addi %11, %87 : vector<8x128xi32>
    %89 = arith.cmpi eq, %88, %10 : vector<8x128xi32>
    %cst_34 = arith.constant 0.000000e+00 : f32
    %90 = vector.broadcast %cst_34 : f32 to vector<8x128xf32>
    %91 = arith.select %89, %85, %90 : vector<8x128xi1>, vector<8x128xf32>
    %92 = arith.addf %82, %91 : vector<8x128xf32>
    %c8_i32_35 = arith.constant 8 : i32
    %93 = arith.index_cast %c8_i32_35 : i32 to index
    %c0_36 = arith.constant 0 : index
    %c0_37 = arith.constant 0 : index
    %94 = vector.load %arg2[%93, %c0_36, %c0_37] : memref<32x8x128xf32, #tpu.memory_space<vmem>>, vector<1x8x128xf32>
    %95 = vector.shape_cast %94 : vector<1x8x128xf32> to vector<8x128xf32>
    %c8_i32_38 = arith.constant 8 : i32
    %96 = arith.muli %c8_i32_35, %c8_i32_38 : i32
    %97 = vector.broadcast %96 : i32 to vector<8x128xi32>
    %98 = arith.addi %11, %97 : vector<8x128xi32>
    %99 = arith.cmpi eq, %98, %10 : vector<8x128xi32>
    %cst_39 = arith.constant 0.000000e+00 : f32
    %100 = vector.broadcast %cst_39 : f32 to vector<8x128xf32>
    %101 = arith.select %99, %95, %100 : vector<8x128xi1>, vector<8x128xf32>
    %102 = arith.addf %92, %101 : vector<8x128xf32>
    %c9_i32 = arith.constant 9 : i32
    %103 = arith.index_cast %c9_i32 : i32 to index
    %c0_40 = arith.constant 0 : index
    %c0_41 = arith.constant 0 : index
    %104 = vector.load %arg2[%103, %c0_40, %c0_41] : memref<32x8x128xf32, #tpu.memory_space<vmem>>, vector<1x8x128xf32>
    %105 = vector.shape_cast %104 : vector<1x8x128xf32> to vector<8x128xf32>
    %c8_i32_42 = arith.constant 8 : i32
    %106 = arith.muli %c9_i32, %c8_i32_42 : i32
    %107 = vector.broadcast %106 : i32 to vector<8x128xi32>
    %108 = arith.addi %11, %107 : vector<8x128xi32>
    %109 = arith.cmpi eq, %108, %10 : vector<8x128xi32>
    %cst_43 = arith.constant 0.000000e+00 : f32
    %110 = vector.broadcast %cst_43 : f32 to vector<8x128xf32>
    %111 = arith.select %109, %105, %110 : vector<8x128xi1>, vector<8x128xf32>
    %112 = arith.addf %102, %111 : vector<8x128xf32>
    %c10_i32 = arith.constant 10 : i32
    %113 = arith.index_cast %c10_i32 : i32 to index
    %c0_44 = arith.constant 0 : index
    %c0_45 = arith.constant 0 : index
    %114 = vector.load %arg2[%113, %c0_44, %c0_45] : memref<32x8x128xf32, #tpu.memory_space<vmem>>, vector<1x8x128xf32>
    %115 = vector.shape_cast %114 : vector<1x8x128xf32> to vector<8x128xf32>
    %c8_i32_46 = arith.constant 8 : i32
    %116 = arith.muli %c10_i32, %c8_i32_46 : i32
    %117 = vector.broadcast %116 : i32 to vector<8x128xi32>
    %118 = arith.addi %11, %117 : vector<8x128xi32>
    %119 = arith.cmpi eq, %118, %10 : vector<8x128xi32>
    %cst_47 = arith.constant 0.000000e+00 : f32
    %120 = vector.broadcast %cst_47 : f32 to vector<8x128xf32>
    %121 = arith.select %119, %115, %120 : vector<8x128xi1>, vector<8x128xf32>
    %122 = arith.addf %112, %121 : vector<8x128xf32>
    %c11_i32 = arith.constant 11 : i32
    %123 = arith.index_cast %c11_i32 : i32 to index
    %c0_48 = arith.constant 0 : index
    %c0_49 = arith.constant 0 : index
    %124 = vector.load %arg2[%123, %c0_48, %c0_49] : memref<32x8x128xf32, #tpu.memory_space<vmem>>, vector<1x8x128xf32>
    %125 = vector.shape_cast %124 : vector<1x8x128xf32> to vector<8x128xf32>
    %c8_i32_50 = arith.constant 8 : i32
    %126 = arith.muli %c11_i32, %c8_i32_50 : i32
    %127 = vector.broadcast %126 : i32 to vector<8x128xi32>
    %128 = arith.addi %11, %127 : vector<8x128xi32>
    %129 = arith.cmpi eq, %128, %10 : vector<8x128xi32>
    %cst_51 = arith.constant 0.000000e+00 : f32
    %130 = vector.broadcast %cst_51 : f32 to vector<8x128xf32>
    %131 = arith.select %129, %125, %130 : vector<8x128xi1>, vector<8x128xf32>
    %132 = arith.addf %122, %131 : vector<8x128xf32>
    %c12_i32 = arith.constant 12 : i32
    %133 = arith.index_cast %c12_i32 : i32 to index
    %c0_52 = arith.constant 0 : index
    %c0_53 = arith.constant 0 : index
    %134 = vector.load %arg2[%133, %c0_52, %c0_53] : memref<32x8x128xf32, #tpu.memory_space<vmem>>, vector<1x8x128xf32>
    %135 = vector.shape_cast %134 : vector<1x8x128xf32> to vector<8x128xf32>
    %c8_i32_54 = arith.constant 8 : i32
    %136 = arith.muli %c12_i32, %c8_i32_54 : i32
    %137 = vector.broadcast %136 : i32 to vector<8x128xi32>
    %138 = arith.addi %11, %137 : vector<8x128xi32>
    %139 = arith.cmpi eq, %138, %10 : vector<8x128xi32>
    %cst_55 = arith.constant 0.000000e+00 : f32
    %140 = vector.broadcast %cst_55 : f32 to vector<8x128xf32>
    %141 = arith.select %139, %135, %140 : vector<8x128xi1>, vector<8x128xf32>
    %142 = arith.addf %132, %141 : vector<8x128xf32>
    %c13_i32 = arith.constant 13 : i32
    %143 = arith.index_cast %c13_i32 : i32 to index
    %c0_56 = arith.constant 0 : index
    %c0_57 = arith.constant 0 : index
    %144 = vector.load %arg2[%143, %c0_56, %c0_57] : memref<32x8x128xf32, #tpu.memory_space<vmem>>, vector<1x8x128xf32>
    %145 = vector.shape_cast %144 : vector<1x8x128xf32> to vector<8x128xf32>
    %c8_i32_58 = arith.constant 8 : i32
    %146 = arith.muli %c13_i32, %c8_i32_58 : i32
    %147 = vector.broadcast %146 : i32 to vector<8x128xi32>
    %148 = arith.addi %11, %147 : vector<8x128xi32>
    %149 = arith.cmpi eq, %148, %10 : vector<8x128xi32>
    %cst_59 = arith.constant 0.000000e+00 : f32
    %150 = vector.broadcast %cst_59 : f32 to vector<8x128xf32>
    %151 = arith.select %149, %145, %150 : vector<8x128xi1>, vector<8x128xf32>
    %152 = arith.addf %142, %151 : vector<8x128xf32>
    %c14_i32 = arith.constant 14 : i32
    %153 = arith.index_cast %c14_i32 : i32 to index
    %c0_60 = arith.constant 0 : index
    %c0_61 = arith.constant 0 : index
    %154 = vector.load %arg2[%153, %c0_60, %c0_61] : memref<32x8x128xf32, #tpu.memory_space<vmem>>, vector<1x8x128xf32>
    %155 = vector.shape_cast %154 : vector<1x8x128xf32> to vector<8x128xf32>
    %c8_i32_62 = arith.constant 8 : i32
    %156 = arith.muli %c14_i32, %c8_i32_62 : i32
    %157 = vector.broadcast %156 : i32 to vector<8x128xi32>
    %158 = arith.addi %11, %157 : vector<8x128xi32>
    %159 = arith.cmpi eq, %158, %10 : vector<8x128xi32>
    %cst_63 = arith.constant 0.000000e+00 : f32
    %160 = vector.broadcast %cst_63 : f32 to vector<8x128xf32>
    %161 = arith.select %159, %155, %160 : vector<8x128xi1>, vector<8x128xf32>
    %162 = arith.addf %152, %161 : vector<8x128xf32>
    %c15_i32 = arith.constant 15 : i32
    %163 = arith.index_cast %c15_i32 : i32 to index
    %c0_64 = arith.constant 0 : index
    %c0_65 = arith.constant 0 : index
    %164 = vector.load %arg2[%163, %c0_64, %c0_65] : memref<32x8x128xf32, #tpu.memory_space<vmem>>, vector<1x8x128xf32>
    %165 = vector.shape_cast %164 : vector<1x8x128xf32> to vector<8x128xf32>
    %c8_i32_66 = arith.constant 8 : i32
    %166 = arith.muli %c15_i32, %c8_i32_66 : i32
    %167 = vector.broadcast %166 : i32 to vector<8x128xi32>
    %168 = arith.addi %11, %167 : vector<8x128xi32>
    %169 = arith.cmpi eq, %168, %10 : vector<8x128xi32>
    %cst_67 = arith.constant 0.000000e+00 : f32
    %170 = vector.broadcast %cst_67 : f32 to vector<8x128xf32>
    %171 = arith.select %169, %165, %170 : vector<8x128xi1>, vector<8x128xf32>
    %172 = arith.addf %162, %171 : vector<8x128xf32>
    %c16_i32 = arith.constant 16 : i32
    %173 = arith.index_cast %c16_i32 : i32 to index
    %c0_68 = arith.constant 0 : index
    %c0_69 = arith.constant 0 : index
    %174 = vector.load %arg2[%173, %c0_68, %c0_69] : memref<32x8x128xf32, #tpu.memory_space<vmem>>, vector<1x8x128xf32>
    %175 = vector.shape_cast %174 : vector<1x8x128xf32> to vector<8x128xf32>
    %c8_i32_70 = arith.constant 8 : i32
    %176 = arith.muli %c16_i32, %c8_i32_70 : i32
    %177 = vector.broadcast %176 : i32 to vector<8x128xi32>
    %178 = arith.addi %11, %177 : vector<8x128xi32>
    %179 = arith.cmpi eq, %178, %10 : vector<8x128xi32>
    %cst_71 = arith.constant 0.000000e+00 : f32
    %180 = vector.broadcast %cst_71 : f32 to vector<8x128xf32>
    %181 = arith.select %179, %175, %180 : vector<8x128xi1>, vector<8x128xf32>
    %182 = arith.addf %172, %181 : vector<8x128xf32>
    %c17_i32 = arith.constant 17 : i32
    %183 = arith.index_cast %c17_i32 : i32 to index
    %c0_72 = arith.constant 0 : index
    %c0_73 = arith.constant 0 : index
    %184 = vector.load %arg2[%183, %c0_72, %c0_73] : memref<32x8x128xf32, #tpu.memory_space<vmem>>, vector<1x8x128xf32>
    %185 = vector.shape_cast %184 : vector<1x8x128xf32> to vector<8x128xf32>
    %c8_i32_74 = arith.constant 8 : i32
    %186 = arith.muli %c17_i32, %c8_i32_74 : i32
    %187 = vector.broadcast %186 : i32 to vector<8x128xi32>
    %188 = arith.addi %11, %187 : vector<8x128xi32>
    %189 = arith.cmpi eq, %188, %10 : vector<8x128xi32>
    %cst_75 = arith.constant 0.000000e+00 : f32
    %190 = vector.broadcast %cst_75 : f32 to vector<8x128xf32>
    %191 = arith.select %189, %185, %190 : vector<8x128xi1>, vector<8x128xf32>
    %192 = arith.addf %182, %191 : vector<8x128xf32>
    %c18_i32 = arith.constant 18 : i32
    %193 = arith.index_cast %c18_i32 : i32 to index
    %c0_76 = arith.constant 0 : index
    %c0_77 = arith.constant 0 : index
    %194 = vector.load %arg2[%193, %c0_76, %c0_77] : memref<32x8x128xf32, #tpu.memory_space<vmem>>, vector<1x8x128xf32>
    %195 = vector.shape_cast %194 : vector<1x8x128xf32> to vector<8x128xf32>
    %c8_i32_78 = arith.constant 8 : i32
    %196 = arith.muli %c18_i32, %c8_i32_78 : i32
    %197 = vector.broadcast %196 : i32 to vector<8x128xi32>
    %198 = arith.addi %11, %197 : vector<8x128xi32>
    %199 = arith.cmpi eq, %198, %10 : vector<8x128xi32>
    %cst_79 = arith.constant 0.000000e+00 : f32
    %200 = vector.broadcast %cst_79 : f32 to vector<8x128xf32>
    %201 = arith.select %199, %195, %200 : vector<8x128xi1>, vector<8x128xf32>
    %202 = arith.addf %192, %201 : vector<8x128xf32>
    %c19_i32 = arith.constant 19 : i32
    %203 = arith.index_cast %c19_i32 : i32 to index
    %c0_80 = arith.constant 0 : index
    %c0_81 = arith.constant 0 : index
    %204 = vector.load %arg2[%203, %c0_80, %c0_81] : memref<32x8x128xf32, #tpu.memory_space<vmem>>, vector<1x8x128xf32>
    %205 = vector.shape_cast %204 : vector<1x8x128xf32> to vector<8x128xf32>
    %c8_i32_82 = arith.constant 8 : i32
    %206 = arith.muli %c19_i32, %c8_i32_82 : i32
    %207 = vector.broadcast %206 : i32 to vector<8x128xi32>
    %208 = arith.addi %11, %207 : vector<8x128xi32>
    %209 = arith.cmpi eq, %208, %10 : vector<8x128xi32>
    %cst_83 = arith.constant 0.000000e+00 : f32
    %210 = vector.broadcast %cst_83 : f32 to vector<8x128xf32>
    %211 = arith.select %209, %205, %210 : vector<8x128xi1>, vector<8x128xf32>
    %212 = arith.addf %202, %211 : vector<8x128xf32>
    %c20_i32 = arith.constant 20 : i32
    %213 = arith.index_cast %c20_i32 : i32 to index
    %c0_84 = arith.constant 0 : index
    %c0_85 = arith.constant 0 : index
    %214 = vector.load %arg2[%213, %c0_84, %c0_85] : memref<32x8x128xf32, #tpu.memory_space<vmem>>, vector<1x8x128xf32>
    %215 = vector.shape_cast %214 : vector<1x8x128xf32> to vector<8x128xf32>
    %c8_i32_86 = arith.constant 8 : i32
    %216 = arith.muli %c20_i32, %c8_i32_86 : i32
    %217 = vector.broadcast %216 : i32 to vector<8x128xi32>
    %218 = arith.addi %11, %217 : vector<8x128xi32>
    %219 = arith.cmpi eq, %218, %10 : vector<8x128xi32>
    %cst_87 = arith.constant 0.000000e+00 : f32
    %220 = vector.broadcast %cst_87 : f32 to vector<8x128xf32>
    %221 = arith.select %219, %215, %220 : vector<8x128xi1>, vector<8x128xf32>
    %222 = arith.addf %212, %221 : vector<8x128xf32>
    %c21_i32 = arith.constant 21 : i32
    %223 = arith.index_cast %c21_i32 : i32 to index
    %c0_88 = arith.constant 0 : index
    %c0_89 = arith.constant 0 : index
    %224 = vector.load %arg2[%223, %c0_88, %c0_89] : memref<32x8x128xf32, #tpu.memory_space<vmem>>, vector<1x8x128xf32>
    %225 = vector.shape_cast %224 : vector<1x8x128xf32> to vector<8x128xf32>
    %c8_i32_90 = arith.constant 8 : i32
    %226 = arith.muli %c21_i32, %c8_i32_90 : i32
    %227 = vector.broadcast %226 : i32 to vector<8x128xi32>
    %228 = arith.addi %11, %227 : vector<8x128xi32>
    %229 = arith.cmpi eq, %228, %10 : vector<8x128xi32>
    %cst_91 = arith.constant 0.000000e+00 : f32
    %230 = vector.broadcast %cst_91 : f32 to vector<8x128xf32>
    %231 = arith.select %229, %225, %230 : vector<8x128xi1>, vector<8x128xf32>
    %232 = arith.addf %222, %231 : vector<8x128xf32>
    %c22_i32 = arith.constant 22 : i32
    %233 = arith.index_cast %c22_i32 : i32 to index
    %c0_92 = arith.constant 0 : index
    %c0_93 = arith.constant 0 : index
    %234 = vector.load %arg2[%233, %c0_92, %c0_93] : memref<32x8x128xf32, #tpu.memory_space<vmem>>, vector<1x8x128xf32>
    %235 = vector.shape_cast %234 : vector<1x8x128xf32> to vector<8x128xf32>
    %c8_i32_94 = arith.constant 8 : i32
    %236 = arith.muli %c22_i32, %c8_i32_94 : i32
    %237 = vector.broadcast %236 : i32 to vector<8x128xi32>
    %238 = arith.addi %11, %237 : vector<8x128xi32>
    %239 = arith.cmpi eq, %238, %10 : vector<8x128xi32>
    %cst_95 = arith.constant 0.000000e+00 : f32
    %240 = vector.broadcast %cst_95 : f32 to vector<8x128xf32>
    %241 = arith.select %239, %235, %240 : vector<8x128xi1>, vector<8x128xf32>
    %242 = arith.addf %232, %241 : vector<8x128xf32>
    %c23_i32 = arith.constant 23 : i32
    %243 = arith.index_cast %c23_i32 : i32 to index
    %c0_96 = arith.constant 0 : index
    %c0_97 = arith.constant 0 : index
    %244 = vector.load %arg2[%243, %c0_96, %c0_97] : memref<32x8x128xf32, #tpu.memory_space<vmem>>, vector<1x8x128xf32>
    %245 = vector.shape_cast %244 : vector<1x8x128xf32> to vector<8x128xf32>
    %c8_i32_98 = arith.constant 8 : i32
    %246 = arith.muli %c23_i32, %c8_i32_98 : i32
    %247 = vector.broadcast %246 : i32 to vector<8x128xi32>
    %248 = arith.addi %11, %247 : vector<8x128xi32>
    %249 = arith.cmpi eq, %248, %10 : vector<8x128xi32>
    %cst_99 = arith.constant 0.000000e+00 : f32
    %250 = vector.broadcast %cst_99 : f32 to vector<8x128xf32>
    %251 = arith.select %249, %245, %250 : vector<8x128xi1>, vector<8x128xf32>
    %252 = arith.addf %242, %251 : vector<8x128xf32>
    %c24_i32 = arith.constant 24 : i32
    %253 = arith.index_cast %c24_i32 : i32 to index
    %c0_100 = arith.constant 0 : index
    %c0_101 = arith.constant 0 : index
    %254 = vector.load %arg2[%253, %c0_100, %c0_101] : memref<32x8x128xf32, #tpu.memory_space<vmem>>, vector<1x8x128xf32>
    %255 = vector.shape_cast %254 : vector<1x8x128xf32> to vector<8x128xf32>
    %c8_i32_102 = arith.constant 8 : i32
    %256 = arith.muli %c24_i32, %c8_i32_102 : i32
    %257 = vector.broadcast %256 : i32 to vector<8x128xi32>
    %258 = arith.addi %11, %257 : vector<8x128xi32>
    %259 = arith.cmpi eq, %258, %10 : vector<8x128xi32>
    %cst_103 = arith.constant 0.000000e+00 : f32
    %260 = vector.broadcast %cst_103 : f32 to vector<8x128xf32>
    %261 = arith.select %259, %255, %260 : vector<8x128xi1>, vector<8x128xf32>
    %262 = arith.addf %252, %261 : vector<8x128xf32>
    %c25_i32 = arith.constant 25 : i32
    %263 = arith.index_cast %c25_i32 : i32 to index
    %c0_104 = arith.constant 0 : index
    %c0_105 = arith.constant 0 : index
    %264 = vector.load %arg2[%263, %c0_104, %c0_105] : memref<32x8x128xf32, #tpu.memory_space<vmem>>, vector<1x8x128xf32>
    %265 = vector.shape_cast %264 : vector<1x8x128xf32> to vector<8x128xf32>
    %c8_i32_106 = arith.constant 8 : i32
    %266 = arith.muli %c25_i32, %c8_i32_106 : i32
    %267 = vector.broadcast %266 : i32 to vector<8x128xi32>
    %268 = arith.addi %11, %267 : vector<8x128xi32>
    %269 = arith.cmpi eq, %268, %10 : vector<8x128xi32>
    %cst_107 = arith.constant 0.000000e+00 : f32
    %270 = vector.broadcast %cst_107 : f32 to vector<8x128xf32>
    %271 = arith.select %269, %265, %270 : vector<8x128xi1>, vector<8x128xf32>
    %272 = arith.addf %262, %271 : vector<8x128xf32>
    %c26_i32 = arith.constant 26 : i32
    %273 = arith.index_cast %c26_i32 : i32 to index
    %c0_108 = arith.constant 0 : index
    %c0_109 = arith.constant 0 : index
    %274 = vector.load %arg2[%273, %c0_108, %c0_109] : memref<32x8x128xf32, #tpu.memory_space<vmem>>, vector<1x8x128xf32>
    %275 = vector.shape_cast %274 : vector<1x8x128xf32> to vector<8x128xf32>
    %c8_i32_110 = arith.constant 8 : i32
    %276 = arith.muli %c26_i32, %c8_i32_110 : i32
    %277 = vector.broadcast %276 : i32 to vector<8x128xi32>
    %278 = arith.addi %11, %277 : vector<8x128xi32>
    %279 = arith.cmpi eq, %278, %10 : vector<8x128xi32>
    %cst_111 = arith.constant 0.000000e+00 : f32
    %280 = vector.broadcast %cst_111 : f32 to vector<8x128xf32>
    %281 = arith.select %279, %275, %280 : vector<8x128xi1>, vector<8x128xf32>
    %282 = arith.addf %272, %281 : vector<8x128xf32>
    %c27_i32 = arith.constant 27 : i32
    %283 = arith.index_cast %c27_i32 : i32 to index
    %c0_112 = arith.constant 0 : index
    %c0_113 = arith.constant 0 : index
    %284 = vector.load %arg2[%283, %c0_112, %c0_113] : memref<32x8x128xf32, #tpu.memory_space<vmem>>, vector<1x8x128xf32>
    %285 = vector.shape_cast %284 : vector<1x8x128xf32> to vector<8x128xf32>
    %c8_i32_114 = arith.constant 8 : i32
    %286 = arith.muli %c27_i32, %c8_i32_114 : i32
    %287 = vector.broadcast %286 : i32 to vector<8x128xi32>
    %288 = arith.addi %11, %287 : vector<8x128xi32>
    %289 = arith.cmpi eq, %288, %10 : vector<8x128xi32>
    %cst_115 = arith.constant 0.000000e+00 : f32
    %290 = vector.broadcast %cst_115 : f32 to vector<8x128xf32>
    %291 = arith.select %289, %285, %290 : vector<8x128xi1>, vector<8x128xf32>
    %292 = arith.addf %282, %291 : vector<8x128xf32>
    %c28_i32 = arith.constant 28 : i32
    %293 = arith.index_cast %c28_i32 : i32 to index
    %c0_116 = arith.constant 0 : index
    %c0_117 = arith.constant 0 : index
    %294 = vector.load %arg2[%293, %c0_116, %c0_117] : memref<32x8x128xf32, #tpu.memory_space<vmem>>, vector<1x8x128xf32>
    %295 = vector.shape_cast %294 : vector<1x8x128xf32> to vector<8x128xf32>
    %c8_i32_118 = arith.constant 8 : i32
    %296 = arith.muli %c28_i32, %c8_i32_118 : i32
    %297 = vector.broadcast %296 : i32 to vector<8x128xi32>
    %298 = arith.addi %11, %297 : vector<8x128xi32>
    %299 = arith.cmpi eq, %298, %10 : vector<8x128xi32>
    %cst_119 = arith.constant 0.000000e+00 : f32
    %300 = vector.broadcast %cst_119 : f32 to vector<8x128xf32>
    %301 = arith.select %299, %295, %300 : vector<8x128xi1>, vector<8x128xf32>
    %302 = arith.addf %292, %301 : vector<8x128xf32>
    %c29_i32 = arith.constant 29 : i32
    %303 = arith.index_cast %c29_i32 : i32 to index
    %c0_120 = arith.constant 0 : index
    %c0_121 = arith.constant 0 : index
    %304 = vector.load %arg2[%303, %c0_120, %c0_121] : memref<32x8x128xf32, #tpu.memory_space<vmem>>, vector<1x8x128xf32>
    %305 = vector.shape_cast %304 : vector<1x8x128xf32> to vector<8x128xf32>
    %c8_i32_122 = arith.constant 8 : i32
    %306 = arith.muli %c29_i32, %c8_i32_122 : i32
    %307 = vector.broadcast %306 : i32 to vector<8x128xi32>
    %308 = arith.addi %11, %307 : vector<8x128xi32>
    %309 = arith.cmpi eq, %308, %10 : vector<8x128xi32>
    %cst_123 = arith.constant 0.000000e+00 : f32
    %310 = vector.broadcast %cst_123 : f32 to vector<8x128xf32>
    %311 = arith.select %309, %305, %310 : vector<8x128xi1>, vector<8x128xf32>
    %312 = arith.addf %302, %311 : vector<8x128xf32>
    %c30_i32 = arith.constant 30 : i32
    %313 = arith.index_cast %c30_i32 : i32 to index
    %c0_124 = arith.constant 0 : index
    %c0_125 = arith.constant 0 : index
    %314 = vector.load %arg2[%313, %c0_124, %c0_125] : memref<32x8x128xf32, #tpu.memory_space<vmem>>, vector<1x8x128xf32>
    %315 = vector.shape_cast %314 : vector<1x8x128xf32> to vector<8x128xf32>
    %c8_i32_126 = arith.constant 8 : i32
    %316 = arith.muli %c30_i32, %c8_i32_126 : i32
    %317 = vector.broadcast %316 : i32 to vector<8x128xi32>
    %318 = arith.addi %11, %317 : vector<8x128xi32>
    %319 = arith.cmpi eq, %318, %10 : vector<8x128xi32>
    %cst_127 = arith.constant 0.000000e+00 : f32
    %320 = vector.broadcast %cst_127 : f32 to vector<8x128xf32>
    %321 = arith.select %319, %315, %320 : vector<8x128xi1>, vector<8x128xf32>
    %322 = arith.addf %312, %321 : vector<8x128xf32>
    %c31_i32 = arith.constant 31 : i32
    %323 = arith.index_cast %c31_i32 : i32 to index
    %c0_128 = arith.constant 0 : index
    %c0_129 = arith.constant 0 : index
    %324 = vector.load %arg2[%323, %c0_128, %c0_129] : memref<32x8x128xf32, #tpu.memory_space<vmem>>, vector<1x8x128xf32>
    %325 = vector.shape_cast %324 : vector<1x8x128xf32> to vector<8x128xf32>
    %c8_i32_130 = arith.constant 8 : i32
    %326 = arith.muli %c31_i32, %c8_i32_130 : i32
    %327 = vector.broadcast %326 : i32 to vector<8x128xi32>
    %328 = arith.addi %11, %327 : vector<8x128xi32>
    %329 = arith.cmpi eq, %328, %10 : vector<8x128xi32>
    %cst_131 = arith.constant 0.000000e+00 : f32
    %330 = vector.broadcast %cst_131 : f32 to vector<8x128xf32>
    %331 = arith.select %329, %325, %330 : vector<8x128xi1>, vector<8x128xf32>
    %332 = arith.addf %322, %331 : vector<8x128xf32>
    %c32_i32 = arith.constant 32 : i32
    %cst_132 = arith.constant dense<0.000000e+00> : vector<128xf32>
    %333 = vector.multi_reduction <add>, %332, %cst_132 [0] : vector<8x128xf32> to vector<128xf32>
    %334 = vector.shape_cast %333 : vector<128xf32> to vector<1x128xf32>
    %c0_133 = arith.constant 0 : index
    %c0_134 = arith.constant 0 : index
    %335 = vector.load %arg3[%c0_133, %c0_134] : memref<1x128xf32, #tpu.memory_space<vmem>>, vector<1x128xf32>
    tpu.vector_store %arg3[%c0_133, %c0_134], %334 {strides = array<i32>} : memref<1x128xf32, #tpu.memory_space<vmem>>, vector<1x128xf32>,
    return
  }
  func.func @transform_0(%arg0: i32) -> (i32, i32) {
    %c0_i32 = arith.constant 0 : i32
    %c0_i32_0 = arith.constant 0 : i32
    return %c0_i32, %arg0 : i32, i32
  }
  func.func @transform_1(%arg0: i32) -> (i32, i32, i32) {
    %c0_i32 = arith.constant 0 : i32
    %c0_i32_0 = arith.constant 0 : i32
    %c0_i32_1 = arith.constant 0 : i32
    %c0_i32_2 = arith.constant 0 : i32
    return %c0_i32, %c0_i32_0, %c0_i32_1 : i32, i32, i32
  }
  func.func @transform_2(%arg0: i32) -> (i32, i32) {
    %c0_i32 = arith.constant 0 : i32
    %c0_i32_0 = arith.constant 0 : i32
    return %c0_i32, %arg0 : i32, i32
  }
}

</mosaic_0001>

<bundles_post_ra>
// kernel: tpu_custom_call.1
= control target key start
LH: loop header
LB: loop body
LE: loop exit
PB: predicated region body
PF: predicated region fallthrough
CT: control target
= control target key end

     0   :  { %7 = vsyncpa [#allocation3], 0  ;;  %s478_s0 = inlined_call_operand.hbm [shape: f32[1,128], index: 0, kind: input, shape index: {}]   ;;  %s479_s1 = inlined_call_operand.hbm [shape: f32[32,8,128], index: 1, kind: input, shape index: {}]   ;;  %s480_s2 = inlined_call_operand.hbm [shape: f32[1,128], index: 2, kind: output, shape index: {}]  }
   0x1   :  { %8 = vsyncpa [#allocation6], 0 }
   0x2   :  { %9 = vsyncpa [#allocation4], 0  ;;  %s346_s9 = smov [#allocation2]   ;;  %s347_s11 = smov [#allocation5]  }
   0x3   :  { %s16_s10 = sshll.u32 %s346_s9, 4  ;;  %s25_s12 = sshll.u32 %s347_s11, 4  ;;  %s17_s10 = int_to_ptr.vmem [resolvable:$true] %s16_s10  ;;  %s366_s12 = int_to_ptr.vmem [resolvable:$true] %s25_s12 }
   0x4   :  { %s274_s15 = scalar_lea.hbm %s478_s0, 16 }
   0x5   :  { %p275_p0 = scmp.ne.s32.totalorder %s478_s0, %s274_s15  ;;  %p278_p1 = scmp.lt.u32.totalorder %s274_s15, %s478_s0 }
   0x7   :  { %p280_p2 = pnand %p278_p1, %p275_p0 }
   0x9   :  { %283 = shalt.err (!%p280_p2)
}
   0xa   :  { %s284_s20 = scalar_lea.vmem %s17_s10, 16  ;;  %s288_s21 = scalar_lea.vmem %s17_s10, 32 }
   0xb   :  { %p285_p3 = scmp.ne.s32.totalorder %s17_s10, %s284_s20  ;;  %p289_p4 = scmp.lt.s32.totalorder %s17_s10, %s17_s10 }
   0xc   :  { %p290_p5 = scmp.lt.s32.totalorder %s288_s21, %s284_s20 }
   0xe   :  { %p291_p6 = por %p290_p5, %p289_p4 }
  0x10   :  { %p292_p7 = pnand %p291_p6, %p285_p3 }
  0x12   :  { %295 = shalt.err (!%p292_p7)
}
  0x13   :  { %19 = dma.hbm_to_vmem [thread:$0]  %s478_s0, 16, %s17_s10, [#allocation3]  }
  0x14   :  { %s296_s26 = scalar_lea.hbm %s479_s1, 4096 }
  0x15   :  { %p297_p8 = scmp.ne.s32.totalorder %s479_s1, %s296_s26  ;;  %p300_p9 = scmp.lt.u32.totalorder %s296_s26, %s479_s1 }
  0x17   :  { %p302_p10 = pnand %p300_p9, %p297_p8 }
  0x19   :  { %305 = shalt.err (!%p302_p10)
}
  0x1a   :  { %s306_s3 = scalar_lea.vmem %s366_s12, 4096  ;;  %p311_p12 = scmp.lt.s32.totalorder %s366_s12, %s366_s12 }
  0x1b   :  { %p307_p11 = scmp.ne.s32.totalorder %s366_s12, %s306_s3  ;;  %p312_p13 = scmp.lt.s32.totalorder %s306_s3, %s306_s3 }
  0x1d   :  { %p313_p0 = por %p312_p13, %p311_p12 }
  0x1f   :  { %p314_p1 = pnand %p313_p0, %p307_p11 }
  0x21   :  { %317 = shalt.err (!%p314_p1)
}
  0x22   :  { %s348_s0 = smov 128   ;;  %s349_s4 = smov 8  }
  0x23   :  { %31 = dma.hbm_to_vmem [thread:$0]  %s479_s1, 4096, %s366_s12, [#allocation6], %s348_s0, %s348_s0, %s349_s4  }
  0x24   :  { %340 = dma.done.wait [#allocation3], 16  }
  0x25   :  { %341 = vsyncadd [#allocation3], 4294967280 }
  0x26   :  { %342 = dma.done.wait [#allocation6], 4096  }
  0x27   :  { %343 = vsyncadd [#allocation6], 4294963200  ;;  %v44_v0 = vlaneseq  ;;  %v38_v1 = vld [vmem:[#allocation2] sm:$0x1]  ;;  %v50_v12 = vld [vmem:[#allocation5] sm:$0xff]  ;;  %s350_s1 = smov [#allocation7]  }
  0x28   :  { %v39_v2 = vmul.f32 250.0, %v38_v1  ;;  %v55_v13 = vld [vmem:[#allocation5 + $0x8] sm:$0xff]  ;;  %v61_v14 = vld [vmem:[#allocation5 + $0x10] sm:$0xff]  ;;  %v67_v17 = vld [vmem:[#allocation5 + $0x18] sm:$0xff]  ;;  %s253_s7 = sshll.u32 %s350_s1, 4  ;;  %s254_s7 = int_to_ptr.vmem [resolvable:$true] %s253_s7 }
  0x29   :  { %v397_v3 = vshrl.u32 %v44_v0, 7  ;;  %v73_v22 = vld [vmem:[#allocation5 + $0x20] sm:$0xff]  ;;  %v79_v26 = vld [vmem:[#allocation5 + $0x28] sm:$0xff]  ;;  %v85_v30 = vld [vmem:[#allocation5 + $0x30] sm:$0xff]  ;;  %s318_s8 = scalar_lea.vmem %s254_s7, 16  ;;  %s322_s9 = scalar_lea.vmem %s254_s7, 32 }
  0x2a   :  { %v263_v4 = vmax.f32 %v39_v2, 0.0  ;;  %v91_v34 = vld [vmem:[#allocation5 + $0x38] sm:$0xff]  ;;  %v97_v38 = vld [vmem:[#allocation5 + $0x40] sm:$0xff]  ;;  %v103_v42 = vld [vmem:[#allocation5 + $0x48] sm:$0xff]  ;;  %p319_p2 = scmp.ne.s32.totalorder %s254_s7, %s318_s8  ;;  %p323_p3 = scmp.lt.s32.totalorder %s254_s7, %s254_s7 }
  0x2b   :  { %v46_v6 = vsub.s32 0, %v397_v3  ;;  %v56_v8 = vadd.s32 8, %v397_v3  ;;  %v62_v9 = vadd.s32 16, %v397_v3  ;;  %v68_v10 = vadd.s32 24, %v397_v3  ;;  %v109_v46 = vld [vmem:[#allocation5 + $0x50] sm:$0xff]  ;;  %v115_v50 = vld [vmem:[#allocation5 + $0x58] sm:$0xff]  ;;  %p324_p4 = scmp.lt.s32.totalorder %s322_s9, %s318_s8 }
  0x2c   :  { %v264_v5 = vmin.f32 %v263_v4, 250.0  ;;  %v74_v15 = vadd.s32 32, %v397_v3  ;;  %v80_v16 = vadd.s32 40, %v397_v3  ;;  %v86_v23 = vadd.s32 48, %v397_v3  ;;  %v121_v54 = vld [vmem:[#allocation5 + $0x60] sm:$0xff]  ;;  %v127_v58 = vld [vmem:[#allocation5 + $0x68] sm:$0xff] }
  0x2d   :  { %v92_v27 = vadd.s32 56, %v397_v3  ;;  %v98_v31 = vadd.s32 64, %v397_v3  ;;  %v104_v35 = vadd.s32 72, %v397_v3  ;;  %v110_v39 = vadd.s32 80, %v397_v3  ;;  %v133_v62 = vld [vmem:[#allocation5 + $0x70] sm:$0xff]  ;;  %v139_v2 = vld [vmem:[#allocation5 + $0x78] sm:$0xff]  ;;  %p325_p5 = por %p324_p4, %p323_p3 }
  0x2e   :  { %v268_v7 = vcvt.f32.s32 %v264_v5  ;;  %v116_v43 = vadd.s32 88, %v397_v3  ;;  %v122_v47 = vadd.s32 96, %v397_v3  ;;  %v128_v51 = vadd.s32 104, %v397_v3 }
  0x2f   :  { %v134_v55 = vadd.s32 112, %v397_v3  ;;  %v140_v59 = vadd.s32 120, %v397_v3  ;;  %v146_v63 = vadd.s32 128, %v397_v3  ;;  %v152_v4 = vadd.s32 136, %v397_v3  ;;  %p326_p6 = pnand %p325_p5, %p319_p2 }
  0x30   :  { %v403_v11 = vrot.slane %v268_v7, %v46_v6  ;;  %v145_v7 = vld [vmem:[#allocation5 + $0x80] sm:$0xff] }
  0x32   :  { %vm51_vm0 = vcmp.eq.s32.totalorder %v397_v3, %v403_v11  ;;  %vm57_vm1 = vcmp.eq.s32.totalorder %v56_v8, %v403_v11  ;;  %vm63_vm2 = vcmp.eq.s32.totalorder %v62_v9, %v403_v11  ;;  %vm69_vm3 = vcmp.eq.s32.totalorder %v68_v10, %v403_v11 }
  0x33   :  { %v52_v18 = vsel %vm51_vm0, %v50_v12, 0.0  ;;  %v58_v19 = vsel %vm57_vm1, %v55_v13, 0.0  ;;  %v64_v20 = vsel %vm63_vm2, %v61_v14, 0.0  ;;  %vm75_vm4 = vcmp.eq.s32.totalorder %v74_v15, %v403_v11  ;;  %v151_v12 = vld [vmem:[#allocation5 + $0x88] sm:$0xff] }
  0x34   :  { %v59_v21 = vadd.f32 %v58_v19, %v52_v18  ;;  %v70_v24 = vsel %vm69_vm3, %v67_v17, 0.0  ;;  %vm81_vm5 = vcmp.eq.s32.totalorder %v80_v16, %v403_v11  ;;  %v76_v28 = vsel %vm75_vm4, %v73_v22, 0.0  ;;  %v157_v16 = vld [vmem:[#allocation5 + $0x90] sm:$0xff] }
  0x35   :  { %vm87_vm6 = vcmp.eq.s32.totalorder %v86_v23, %v403_v11  ;;  %v82_v32 = vsel %vm81_vm5, %v79_v26, 0.0  ;;  %vm93_vm7 = vcmp.eq.s32.totalorder %v92_v27, %v403_v11  ;;  %vm99_vm8 = vcmp.eq.s32.totalorder %v98_v31, %v403_v11 }
  0x36   :  { %v65_v25 = vadd.f32 %v64_v20, %v59_v21  ;;  %v88_v36 = vsel %vm87_vm6, %v85_v30, 0.0  ;;  %v94_v40 = vsel %vm93_vm7, %v91_v34, 0.0  ;;  %vm105_vm9 = vcmp.eq.s32.totalorder %v104_v35, %v403_v11  ;;  %v163_v20 = vld [vmem:[#allocation5 + $0x98] sm:$0xff] }
  0x37   :  { %v100_v44 = vsel %vm99_vm8, %v97_v38, 0.0  ;;  %vm111_vm10 = vcmp.eq.s32.totalorder %v110_v39, %v403_v11  ;;  %v106_v48 = vsel %vm105_vm9, %v103_v42, 0.0  ;;  %vm117_vm11 = vcmp.eq.s32.totalorder %v116_v43, %v403_v11 }
  0x38   :  { %v71_v29 = vadd.f32 %v70_v24, %v65_v25  ;;  %v112_v52 = vsel %vm111_vm10, %v109_v46, 0.0  ;;  %vm123_vm12 = vcmp.eq.s32.totalorder %v122_v47, %v403_v11  ;;  %v118_v56 = vsel %vm117_vm11, %v115_v50, 0.0  ;;  %v169_v24 = vld [vmem:[#allocation5 + $0xa0] sm:$0xff] }
  0x39   :  { %vm129_vm13 = vcmp.eq.s32.totalorder %v128_v51, %v403_v11  ;;  %v124_v60 = vsel %vm123_vm12, %v121_v54, 0.0  ;;  %vm135_vm14 = vcmp.eq.s32.totalorder %v134_v55, %v403_v11  ;;  %vm141_vm15 = vcmp.eq.s32.totalorder %v140_v59, %v403_v11 }
  0x3a   :  { %v77_v33 = vadd.f32 %v76_v28, %v71_v29  ;;  %v130_v0 = vsel %vm129_vm13, %v127_v58, 0.0  ;;  %v136_v5 = vsel %vm135_vm14, %v133_v62, 0.0  ;;  %vm147_vm0 = vcmp.eq.s32.totalorder %v146_v63, %v403_v11  ;;  %v175_v28 = vld [vmem:[#allocation5 + $0xa8] sm:$0xff] }
  0x3b   :  { %v158_v8 = vadd.s32 144, %v397_v3  ;;  %v142_v9 = vsel %vm141_vm15, %v139_v2, 0.0  ;;  %vm153_vm1 = vcmp.eq.s32.totalorder %v152_v4, %v403_v11  ;;  %v164_v13 = vadd.s32 152, %v397_v3  ;;  %v235_v4 = vld [vmem:[#allocation5 + $0xf8] sm:$0xff] }
  0x3c   :  { %v83_v37 = vadd.f32 %v82_v32, %v77_v33  ;;  %v148_v14 = vsel %vm147_vm0, %v145_v7, 0.0  ;;  %v170_v17 = vadd.s32 160, %v397_v3  ;;  %v154_v18 = vsel %vm153_vm1, %v151_v12, 0.0  ;;  %v181_v32 = vld [vmem:[#allocation5 + $0xb0] sm:$0xff] }
  0x3d   :  { %vm159_vm2 = vcmp.eq.s32.totalorder %v158_v8, %v403_v11  ;;  %vm165_vm3 = vcmp.eq.s32.totalorder %v164_v13, %v403_v11  ;;  %v176_v21 = vadd.s32 168, %v397_v3  ;;  %v182_v25 = vadd.s32 176, %v397_v3 }
  0x3e   :  { %v89_v41 = vadd.f32 %v88_v36, %v83_v37  ;;  %v160_v22 = vsel %vm159_vm2, %v157_v16, 0.0  ;;  %vm171_vm4 = vcmp.eq.s32.totalorder %v170_v17, %v403_v11  ;;  %v166_v26 = vsel %vm165_vm3, %v163_v20, 0.0  ;;  %v187_v36 = vld [vmem:[#allocation5 + $0xb8] sm:$0xff] }
  0x3f   :  { %vm177_vm5 = vcmp.eq.s32.totalorder %v176_v21, %v403_v11  ;;  %v188_v29 = vadd.s32 184, %v397_v3  ;;  %v172_v30 = vsel %vm171_vm4, %v169_v24, 0.0  ;;  %vm183_vm6 = vcmp.eq.s32.totalorder %v182_v25, %v403_v11 }
  0x40   :  { %v95_v45 = vadd.f32 %v94_v40, %v89_v41  ;;  %v194_v33 = vadd.s32 192, %v397_v3  ;;  %v178_v34 = vsel %vm177_vm5, %v175_v28, 0.0  ;;  %v200_v37 = vadd.s32 200, %v397_v3  ;;  %v193_v40 = vld [vmem:[#allocation5 + $0xc0] sm:$0xff] }
  0x41   :  { %vm189_vm7 = vcmp.eq.s32.totalorder %v188_v29, %v403_v11  ;;  %v184_v38 = vsel %vm183_vm6, %v181_v32, 0.0  ;;  %v206_v41 = vadd.s32 208, %v397_v3 }
  0x42   :  { %v101_v49 = vadd.f32 %v100_v44, %v95_v45  ;;  %vm195_vm8 = vcmp.eq.s32.totalorder %v194_v33, %v403_v11  ;;  %v190_v42 = vsel %vm189_vm7, %v187_v36, 0.0  ;;  %v199_v44 = vld [vmem:[#allocation5 + $0xc8] sm:$0xff]  ;;  %vm201_vm9 = vcmp.eq.s32.totalorder %v200_v37, %v403_v11 }
  0x43   :  { %v212_v45 = vadd.s32 216, %v397_v3  ;;  %v196_v46 = vsel %vm195_vm8, %v193_v40, 0.0  ;;  %vm207_vm10 = vcmp.eq.s32.totalorder %v206_v41, %v403_v11  ;;  %v202_v50 = vsel %vm201_vm9, %v199_v44, 0.0 }
  0x44   :  { %v107_v53 = vadd.f32 %v106_v48, %v101_v49  ;;  %v205_v48 = vld [vmem:[#allocation5 + $0xd0] sm:$0xff]  ;;  %v218_v49 = vadd.s32 224, %v397_v3 }
  0x45   :  { %vm213_vm11 = vcmp.eq.s32.totalorder %v212_v45, %v403_v11  ;;  %v208_v54 = vsel %vm207_vm10, %v205_v48, 0.0 }
  0x46   :  { %v113_v57 = vadd.f32 %v112_v52, %v107_v53  ;;  %v211_v52 = vld [vmem:[#allocation5 + $0xd8] sm:$0xff]  ;;  %v224_v53 = vadd.s32 232, %v397_v3  ;;  %vm219_vm12 = vcmp.eq.s32.totalorder %v218_v49, %v403_v11 }
  0x47   :  { %v214_v58 = vsel %vm213_vm11, %v211_v52, 0.0 }
  0x48   :  { %v119_v61 = vadd.f32 %v118_v56, %v113_v57  ;;  %v217_v56 = vld [vmem:[#allocation5 + $0xe0] sm:$0xff]  ;;  %v230_v57 = vadd.s32 240, %v397_v3  ;;  %vm225_vm13 = vcmp.eq.s32.totalorder %v224_v53, %v403_v11 }
  0x49   :  { %v220_v62 = vsel %vm219_vm12, %v217_v56, 0.0 }
  0x4a   :  { %v125_v1 = vadd.f32 %v124_v60, %v119_v61  ;;  %v223_v60 = vld [vmem:[#allocation5 + $0xe8] sm:$0xff]  ;;  %v236_v61 = vadd.s32 248, %v397_v3  ;;  %vm231_vm14 = vcmp.eq.s32.totalorder %v230_v57, %v403_v11 }
  0x4c   :  { %v131_v6 = vadd.f32 %v130_v0, %v125_v1  ;;  %v229_v0 = vld [vmem:[#allocation5 + $0xf0] sm:$0xff]  ;;  %v226_v1 = vsel %vm225_vm13, %v223_v60, 0.0  ;;  %vm237_vm15 = vcmp.eq.s32.totalorder %v236_v61, %v403_v11 }
  0x4d   :  { %v238_v7 = vsel %vm237_vm15, %v235_v4, 0.0 }
  0x4e   :  { %v137_v10 = vadd.f32 %v136_v5, %v131_v6  ;;  %v232_v5 = vsel %vm231_vm14, %v229_v0, 0.0 }
  0x50   :  { %v143_v15 = vadd.f32 %v142_v9, %v137_v10 }
  0x52   :  { %v149_v19 = vadd.f32 %v148_v14, %v143_v15 }
  0x54   :  { %v155_v23 = vadd.f32 %v154_v18, %v149_v19 }
  0x56   :  { %v161_v27 = vadd.f32 %v160_v22, %v155_v23 }
  0x58   :  { %v167_v31 = vadd.f32 %v166_v26, %v161_v27 }
  0x5a   :  { %v173_v35 = vadd.f32 %v172_v30, %v167_v31 }
  0x5c   :  { %v179_v39 = vadd.f32 %v178_v34, %v173_v35 }
  0x5e   :  { %v185_v43 = vadd.f32 %v184_v38, %v179_v39 }
  0x60   :  { %v191_v47 = vadd.f32 %v190_v42, %v185_v43 }
  0x62   :  { %v197_v51 = vadd.f32 %v196_v46, %v191_v47 }
  0x64   :  { %v203_v55 = vadd.f32 %v202_v50, %v197_v51 }
  0x66   :  { %v209_v59 = vadd.f32 %v208_v54, %v203_v55 }
  0x68   :  { %v215_v63 = vadd.f32 %v214_v58, %v209_v59 }
  0x6a   :  { %v221_v2 = vadd.f32 %v220_v62, %v215_v63 }
  0x6c   :  { %v227_v6 = vadd.f32 %v226_v1, %v221_v2 }
  0x6e   :  { %v233_v8 = vadd.f32 %v232_v5, %v227_v6 }
  0x70   :  { %v239_v9 = vadd.f32 %v238_v7, %v233_v8 }
  0x72   :  { %v240_v10 = vrot.slane %v239_v9, 4 }
  0x74   :  { %v241_v12 = vadd.f32 %v240_v10, %v239_v9 }
  0x76   :  { %v242_v13 = vrot.slane %v241_v12, 2 }
  0x78   :  { %v243_v14 = vadd.f32 %v242_v13, %v241_v12 }
  0x7a   :  { %v244_v3 = vrot.slane %v243_v14, 1 }
  0x7c   :  { %v245_v15 = vadd.f32 %v244_v3, %v243_v14 }
  0x7e   :  { %246 = vst [vmem:[#allocation7] sm:$0x1] %v245_v15 }
  0x7f   :  { %329 = shalt.err (!%p326_p6)
}
  0x80   :  { %s330_s12 = scalar_lea.hbm %s480_s2, 16 }
  0x81   :  { %p331_p7 = scmp.ne.s32.totalorder %s480_s2, %s330_s12  ;;  %p334_p8 = scmp.lt.u32.totalorder %s330_s12, %s480_s2 }
  0x83   :  { %p336_p9 = pnand %p334_p8, %p331_p7 }
  0x85   :  { %339 = shalt.err (!%p336_p9)
}
  0x86   :  { %256 = dma.vmem_to_hbm [thread:$0]  %s254_s7, 16, %s480_s2, [#allocation4]  }
  0x87   :  { %344 = dma.done.wait [#allocation4], 16  }
  0x88   :  { %345 = vsyncadd [#allocation4], 4294967280 }
  0x89   :  { %260 = vsyncpa [#allocation3], 1 }
  0x8a   :  { %261 = vsyncpa [#allocation6], 1 }
  0x8b   :  { %262 = vsyncpa [#allocation4], 1 }

</bundles_post_ra>
